<compile_context>
chip_gen: v5e
topology: v5e:2x2
jax: 0.10.0
libtpu: 0.0.40
codegen_flags: <defaults>
</compile_context>

<pallas_src>
import jax
import jax.numpy as jnp
from jax.experimental import pallas as pl
from jax.experimental.pallas import tpu as pltpu

HIDDEN = 128
SUBLANE = 8  # f32 sublane packing: batch tile kept a multiple of 8


def _round_up(x, m):
    return ((x + m - 1) // m) * m


def dqn_kernel(x_ref, w1_ref, b1_ref, w2_ref, b2_ref, o_ref):
    """One batch tile: (TB,in)@(in,128) -> +b1 -> ReLU -> (TB,128)@(128,out) -> +b2."""
    # In-kernel bf16 cast of x (VPU, hidden under the streaming DMA); f32 accumulation.
    x = x_ref[...].astype(jnp.bfloat16)
    h = jnp.dot(x, w1_ref[...], preferred_element_type=jnp.float32)
    h = jnp.maximum(h + b1_ref[...], 0.0)                      # bias + ReLU in f32 (VPU)
    # Layer 2: pack activations to bf16 for native MXU rate; keep f32 accumulation.
    y = jnp.dot(h.astype(jnp.bfloat16), w2_ref[...],
                preferred_element_type=jnp.float32)
    o_ref[...] = (y + b2_ref[...]).astype(o_ref.dtype)


def _choose_batch_tile(batch, batch_tile):
    """Balance the grid: >= ceil(B/batch_tile) steps, >=2 steps when B is large
    enough so the second v7x TensorCore gets work; tile is a multiple of 8."""
    steps = pl.cdiv(batch, batch_tile)
    if batch >= 2 * SUBLANE:
        steps = max(steps, 2)
    tb = _round_up(pl.cdiv(batch, steps), SUBLANE)
    tb = min(tb, _round_up(batch, SUBLANE))
    return tb


def dqn_forward(x, w1, b1, w2, b2, *, batch_tile=4096):
    """x: (B, in) f32; w1: (in, 128); b1: (1, 128); w2: (128, out); b2: (1, out)."""
    B, in_size = x.shape
    hidden, out_size = w2.shape
    assert w1.shape == (in_size, hidden) and hidden == HIDDEN

    tb = _choose_batch_tile(B, batch_tile)
    grid = (pl.cdiv(B, tb),)  # non-divisible batches: edge block is masked, no jnp.pad

    # Weight/bias casts are tiny, one-time wrapper ops; x stays f32 (cast in-kernel).
    w1_bf = w1.astype(jnp.bfloat16)
    w2_bf = w2.astype(jnp.bfloat16)
    b1_f = b1.astype(jnp.float32)
    b2_f = b2.astype(jnp.float32)

    out = pl.pallas_call(
        dqn_kernel,
        out_shape=jax.ShapeDtypeStruct((B, out_size), jnp.float32),
        grid=grid,
        in_specs=[
            pl.BlockSpec((tb, in_size), lambda i: (i, 0)),      # x: streamed per batch tile
            pl.BlockSpec((in_size, hidden), lambda i: (0, 0)),  # w1: VMEM-resident
            pl.BlockSpec((1, hidden), lambda i: (0, 0)),        # b1: VMEM-resident
            pl.BlockSpec((hidden, out_size), lambda i: (0, 0)), # w2: VMEM-resident
            pl.BlockSpec((1, out_size), lambda i: (0, 0)),      # b2: VMEM-resident
        ],
        out_specs=pl.BlockSpec((tb, out_size), lambda i: (i, 0)),  # unpadded (full out dim)
        compiler_params=pltpu.CompilerParams(
            dimension_semantics=("parallel",)),  # batch tiles shard across v7x's 2 TCs
    )(x, w1_bf, b1_f, w2_bf, b2_f)

    return out


def init_dqn_params(key, input_size, output_size, hidden=HIDDEN, dtype=jnp.float32):
    """Deterministic init mirroring torch.nn.Linear default: U(-1/sqrt(fan_in), 1/sqrt(fan_in))."""
    k1, k2, k3, k4 = jax.random.split(key, 4)
    bound1 = 1.0 / (input_size ** 0.5)
    bound2 = 1.0 / (hidden ** 0.5)
    w1 = jax.random.uniform(k1, (input_size, hidden), dtype, -bound1, bound1)
    b1 = jax.random.uniform(k2, (1, hidden), dtype, -bound1, bound1)
    w2 = jax.random.uniform(k3, (hidden, output_size), dtype, -bound2, bound2)
    b2 = jax.random.uniform(k4, (1, output_size), dtype, -bound2, bound2)
    return w1, b1, w2, b2


if __name__ == "__main__":
    key = jax.random.PRNGKey(0)
    kx, kp = jax.random.split(key)

    B = 8            # batch (small demo; kernel tiles the batch internally)
    input_size = 32  # observation dim
    output_size = 8  # number of actions

    x = jax.random.normal(kx, (B, input_size), jnp.float32)
    w1, b1, w2, b2 = init_dqn_params(kp, input_size, output_size)

    out = dqn_forward(x, w1, b1, w2, b2)
    out = jax.block_until_ready(out)

    # Reference in plain f32 JAX (kernel uses bf16 MXU operands -> loose tolerance).
    ref = jnp.maximum(x @ w1 + b1, 0.0) @ w2 + b2
    assert out.shape == (B, output_size)
    assert jnp.allclose(out, ref, atol=2e-2, rtol=2e-2)

    print("KERNEL_OK")
</pallas_src>

<mosaic_0001>
module attributes {stable_mosaic.version = 11 : i64} {
  func.func @dqn_kernel(%arg0: i32, %arg1: memref<8x32xf32, #tpu.memory_space<vmem>>, %arg2: memref<32x128xbf16, #tpu.memory_space<vmem>>, %arg3: memref<1x128xf32, #tpu.memory_space<vmem>>, %arg4: memref<128x8xbf16, #tpu.memory_space<vmem>>, %arg5: memref<1x8xf32, #tpu.memory_space<vmem>>, %arg6: memref<8x8xf32, #tpu.memory_space<vmem>>) attributes {dimension_semantics = [#tpu.dimension_semantics<parallel>], iteration_bounds = array<i64: 1>, scalar_prefetch = 0 : i64, scratch_operands = 0 : i64, tpu.core_type = #tpu.core_type<tc>, window_params = [{transform_indices = @transform_0, window_bounds = array<i64: 8, 32>}, {pipeline_mode = #tpu.pipeline_mode<synchronous>, transform_indices = @transform_1, window_bounds = array<i64: 32, 128>}, {pipeline_mode = #tpu.pipeline_mode<synchronous>, transform_indices = @transform_2, window_bounds = array<i64: 1, 128>}, {pipeline_mode = #tpu.pipeline_mode<synchronous>, transform_indices = @transform_3, window_bounds = array<i64: 128, 8>}, {pipeline_mode = #tpu.pipeline_mode<synchronous>, transform_indices = @transform_4, window_bounds = array<i64: 1, 8>}, {transform_indices = @transform_5, window_bounds = array<i64: 8, 8>}]} {
    %c0 = arith.constant 0 : index
    %c0_0 = arith.constant 0 : index
    %0 = vector.load %arg1[%c0, %c0_0] : memref<8x32xf32, #tpu.memory_space<vmem>>, vector<8x32xf32>
    %1 = arith.truncf %0 : vector<8x32xf32> to vector<8x32xbf16>
    %c0_1 = arith.constant 0 : index
    %c0_2 = arith.constant 0 : index
    %2 = vector.load %arg2[%c0_1, %c0_2] : memref<32x128xbf16, #tpu.memory_space<vmem>>, vector<32x128xbf16>
    %cst = arith.constant dense<0.000000e+00> : vector<8x128xf32>
    %3 = tpu.matmul %1, %2, %cst {dimension_numbers = #tpu.dot_dimension_numbers<[1], [0], [0], [1], [0, 0, 1, 1], [], []>} : vector<8x32xbf16>, vector<32x128xbf16>, vector<8x128xf32> -> vector<8x128xf32>
    %c0_3 = arith.constant 0 : index
    %c0_4 = arith.constant 0 : index
    %4 = vector.load %arg3[%c0_3, %c0_4] : memref<1x128xf32, #tpu.memory_space<vmem>>, vector<1x128xf32>
    %5 = vector.broadcast %4 : vector<1x128xf32> to vector<8x128xf32>
    %6 = arith.addf %3, %5 : vector<8x128xf32>
    %cst_5 = arith.constant 0.000000e+00 : f32
    %7 = vector.broadcast %cst_5 : f32 to vector<8x128xf32>
    %8 = arith.maximumf %6, %7 : vector<8x128xf32>
    %9 = arith.truncf %8 : vector<8x128xf32> to vector<8x128xbf16>
    %c0_6 = arith.constant 0 : index
    %c0_7 = arith.constant 0 : index
    %10 = vector.load %arg4[%c0_6, %c0_7] : memref<128x8xbf16, #tpu.memory_space<vmem>>, vector<128x8xbf16>
    %cst_8 = arith.constant dense<0.000000e+00> : vector<8x8xf32>
    %11 = tpu.matmul %9, %10, %cst_8 {dimension_numbers = #tpu.dot_dimension_numbers<[1], [0], [0], [1], [0, 0, 1, 1], [], []>} : vector<8x128xbf16>, vector<128x8xbf16>, vector<8x8xf32> -> vector<8x8xf32>
    %c0_9 = arith.constant 0 : index
    %c0_10 = arith.constant 0 : index
    %12 = vector.load %arg5[%c0_9, %c0_10] : memref<1x8xf32, #tpu.memory_space<vmem>>, vector<1x8xf32>
    %13 = vector.broadcast %12 : vector<1x8xf32> to vector<8x8xf32>
    %14 = arith.addf %11, %13 : vector<8x8xf32>
    %c0_11 = arith.constant 0 : index
    %c0_12 = arith.constant 0 : index
    %15 = vector.load %arg6[%c0_11, %c0_12] : memref<8x8xf32, #tpu.memory_space<vmem>>, vector<8x8xf32>
    tpu.vector_store %arg6[%c0_11, %c0_12], %14 {strides = array<i32>} : memref<8x8xf32, #tpu.memory_space<vmem>>, vector<8x8xf32>,
    return
  }
  func.func @transform_0(%arg0: i32) -> (i32, i32) {
    %c0_i32 = arith.constant 0 : i32
    %c0_i32_0 = arith.constant 0 : i32
    return %arg0, %c0_i32 : i32, i32
  }
  func.func @transform_1(%arg0: i32) -> (i32, i32) {
    %c0_i32 = arith.constant 0 : i32
    %c0_i32_0 = arith.constant 0 : i32
    %c0_i32_1 = arith.constant 0 : i32
    return %c0_i32, %c0_i32_0 : i32, i32
  }
  func.func @transform_2(%arg0: i32) -> (i32, i32) {
    %c0_i32 = arith.constant 0 : i32
    %c0_i32_0 = arith.constant 0 : i32
    %c0_i32_1 = arith.constant 0 : i32
    return %c0_i32, %c0_i32_0 : i32, i32
  }
  func.func @transform_3(%arg0: i32) -> (i32, i32) {
    %c0_i32 = arith.constant 0 : i32
    %c0_i32_0 = arith.constant 0 : i32
    %c0_i32_1 = arith.constant 0 : i32
    return %c0_i32, %c0_i32_0 : i32, i32
  }
  func.func @transform_4(%arg0: i32) -> (i32, i32) {
    %c0_i32 = arith.constant 0 : i32
    %c0_i32_0 = arith.constant 0 : i32
    %c0_i32_1 = arith.constant 0 : i32
    return %c0_i32, %c0_i32_0 : i32, i32
  }
  func.func @transform_5(%arg0: i32) -> (i32, i32) {
    %c0_i32 = arith.constant 0 : i32
    %c0_i32_0 = arith.constant 0 : i32
    return %arg0, %c0_i32 : i32, i32
  }
}

</mosaic_0001>

<bundles_post_ra>
// kernel: tpu_custom_call.1
= control target key start
LH: loop header
LB: loop body
LE: loop exit
PB: predicated region body
PF: predicated region fallthrough
CT: control target
= control target key end

     0   :  { %s315_s0 = inlined_call_operand.vmem [shape: f32[8,32], index: 0, kind: input, shape index: {}]   ;;  %s316_s1 = inlined_call_operand.vmem [shape: bf16[32,128], index: 1, kind: input, shape index: {}]   ;;  %s317_s2 = inlined_call_operand.vmem [shape: f32[1,128], index: 2, kind: input, shape index: {}]   ;;  %s318_s3 = inlined_call_operand.vmem [shape: bf16[128,8], index: 3, kind: input, shape index: {}]   ;;  %s319_s4 = inlined_call_operand.vmem [shape: f32[1,8], index: 4, kind: input, shape index: {}]   ;;  %s320_s5 = inlined_call_operand.hbm [shape: f32[8,8], index: 5, kind: output, shape index: {}]  }
   0x1   :  { %v204_v0 = vld [vmem:[%s316_s1 + $0x8] sm:$0xff]  ;;  %v212_v1 = vld [vmem:[%s318_s3 + $0x38] sm:$0xff]  ;;  %v203_v2 = vld [vmem:[%s316_s1] sm:$0xff] }
   0x2   :  { %54 = vmatpush.bf16.msra.mxu0 %v204_v0  ;;  %v22_v3 = vld [vmem:[%s315_s0] sm:$0xff]  ;;  %131 = vmatpush.bf16.msra.mxu1 %v212_v1  ;;  %v211_v4 = vld [vmem:[%s318_s3 + $0x30] sm:$0xff] }
   0x3   :  { %10 = vsyncpa [#allocation3], 0  ;;  %v23_v5 = vpack.c.bf16 %v22_v3, %v22_v3  ;;  %vm44_vm0 = vcmask 261120   ;;  %v210_v6 = vld [vmem:[%s318_s3 + $0x28] sm:$0xff]  ;;  %v209_v7 = vld [vmem:[%s318_s3 + $0x20] sm:$0xff]  ;;  %s242_s17 = smov [#allocation2]  }
   0x4   :  { %v208_v8 = vld [vmem:[%s318_s3 + $0x18] sm:$0xff]  ;;  %v207_v9 = vld [vmem:[%s318_s3 + $0x10] sm:$0xff]  ;;  %v206_v10 = vld [vmem:[%s318_s3 + $0x8] sm:$0xff]  ;;  %s151_s18 = sshll.u32 %s242_s17, 4  ;;  %vm144_vm1 = vcmask 64512   ;;  %s152_s18 = int_to_ptr.vmem [resolvable:$true] %s151_s18 }
   0x5   :  { %v205_v11 = vld [vmem:[%s318_s3] sm:$0xff]  ;;  %s153_s3 = sshll.u32 %s320_s5, 4  ;;  %s154_s3 = int_to_ptr.hbm [resolvable:$true] %s153_s3 }
   0x6   :  { %55 = vmatpush.bf16.msra.mxu0 %v203_v2  ;;  %132 = vmatpush.bf16.msra.mxu1 %v211_v4  ;;  %v214_v12 = vld [vmem:[%s317_s2] ss:$0 sm:$0xff] }
   0x7   :  { %v215_v18 = vld [vmem:[%s319_s4] ss:$0 sm:$0xff] }
   0x9   :  { %170 = vmatmul.msk.bf16.vlgmr.msra.gmra.mxu0 %vm44_vm0, %v23_v5 }
   0xa   :  { %133 = vmatpush.bf16.msra.mxu1 %v210_v6 }
   0xe   :  { %134 = vmatpush.bf16.msra.mxu1 %v209_v7 }
  0x12   :  { %135 = vmatpush.bf16.msra.mxu1 %v208_v8 }
  0x16   :  { %136 = vmatpush.bf16.msra.mxu1 %v207_v9 }
  0x1a   :  { %137 = vmatpush.bf16.msra.mxu1 %v206_v10 }
  0x1e   :  { %138 = vmatpush.bf16.msra.mxu1 %v205_v11 }
  0x86   :  { %v57_v13 = vpop.f32.mrf.mxu0 }
  0x87   :  { %v58_v14 = vadd.f32 %v214_v12, %v57_v13 }
  0x89   :  { %v61_v15 = vmax.f32 %v58_v14, 0.0 }
  0x8b   :  { %v62_v16 = vpack.c.bf16 %v61_v15, %v61_v15 }
  0x8d   :  { %139 = vmatmul.bf16.vlgmr.msra.gmra.mxu1 %v62_v16 }
  0x8e   :  { %v59_v17 = vpop.f32.mrf.mxu0 }
 0x10a   :  { %v140_v19 = vpop.f32.mrf.mxu1 }
 0x10b   :  { %v141_v20 = vadd.f32 %v215_v18, %v140_v19 }
 0x10d   :  { %145 = vst.msk [vmem:[#allocation2] sm:$0xff] %vm144_vm1, %v141_v20 }
 0x10e   :  { %156 = dma.vmem_to_hbm [thread:$0]  %s152_s18, 128, %s154_s3, [#allocation3]  }
 0x112   :  { %v142_v21 = vpop.f32.mrf.mxu1 }
 0x113   :  { %240 = dma.done.wait [#allocation3], 128  }
 0x114   :  { %241 = vsyncadd [#allocation3], 4294967168 }
 0x115   :  { %161 = vsyncpa [#allocation3], 1 }

</bundles_post_ra>
